<compile_context>
chip_gen: v7x
topology: tpu7x:2x2x1
jax: 0.10.0
libtpu: 0.0.40
codegen_flags: <defaults>
</compile_context>

<pallas_src>
import jax
import jax.numpy as jnp
from jax.experimental import pallas as pl
from jax.experimental.pallas import tpu as pltpu


def _adaptive_tanh_kernel(alpha_ref, beta_ref, x_ref, o_ref):
    # alpha_ref / beta_ref: (tn, 1) f32; x_ref / o_ref: (tn, tm) in x.dtype.
    x = x_ref[...].astype(jnp.float32)             # f32 math (v5e-safe)
    y = alpha_ref[...] * jnp.tanh(beta_ref[...] * x)
    o_ref[...] = y.astype(o_ref.dtype)


def _round_up(v, m):
    return ((v + m - 1) // m) * m


def adaptive_tanh(x, alpha, beta, *, tn=256, tm=1024):
    """out = alpha[:, None] * tanh(beta[:, None] * x).

    x: (..., N, M); alpha, beta: (N,).  Returns same shape/dtype as x.
    """
    *lead, N, M = x.shape
    assert alpha.shape == (N,) and beta.shape == (N,)

    B = 1
    for d in lead:
        B *= d
    R = B * N

    # Collapse to 2-D rows x lanes (free reshape for contiguous x).
    x2 = x.reshape(R, M)
    a2 = jnp.broadcast_to(alpha.astype(jnp.float32)[None, :], (B, N)).reshape(R, 1)
    b2 = jnp.broadcast_to(beta.astype(jnp.float32)[None, :], (B, N)).reshape(R, 1)

    # Tile sizes: multiples of (8, 128) capped at the array extents (never
    # larger than the dim); dims smaller than the alignment use the full dim.
    if R < 8:
        tn_eff = R
    else:
        tn_eff = min(_round_up(max(tn, 8), 8), (R // 8) * 8)
    if M < 128:
        tm_eff = M
    else:
        tm_eff = min(_round_up(max(tm, 128), 128), (M // 128) * 128)

    grid = (pl.cdiv(R, tn_eff), pl.cdiv(M, tm_eff))
    itemsize = jnp.dtype(x.dtype).itemsize
    bytes_io = 2 * R * M * itemsize + 2 * R * 4

    out2 = pl.pallas_call(
        _adaptive_tanh_kernel,
        out_shape=jax.ShapeDtypeStruct((R, M), x.dtype),
        grid_spec=pltpu.PrefetchScalarGridSpec(
            num_scalar_prefetch=0,
            grid=grid,
            in_specs=[
                # params: tiny (tn, 1) blocks, indexed by the row axis only
                # (M is the innermost grid axis -> no re-DMA across it).
                pl.BlockSpec((tn_eff, 1), lambda r, m: (r, 0)),
                pl.BlockSpec((tn_eff, 1), lambda r, m: (r, 0)),
                # x: lane-dense (tn, tm) tile; ragged edges masked by Pallas.
                pl.BlockSpec((tn_eff, tm_eff), lambda r, m: (r, m)),
            ],
            out_specs=pl.BlockSpec((tn_eff, tm_eff), lambda r, m: (r, m)),
        ),
        compiler_params=pltpu.CompilerParams(
            dimension_semantics=("parallel", "parallel")),
        cost_estimate=pl.CostEstimate(
            flops=2 * R * M,
            transcendentals=R * M,
            bytes_accessed=bytes_io),
    )(a2, b2, x2)

    return out2.reshape(x.shape)


if __name__ == "__main__":
    key = jax.random.PRNGKey(0)
    k1, k2 = jax.random.split(key)

    # 1) Small demo shape matching the module: batch=2, n=4 channels, 16 feats.
    B, N, M = 2, 4, 16
    x = jax.random.normal(k1, (B, N, M), dtype=jnp.float32)
    # Module __init__: alpha = ones(n), beta = ones(n)
    alpha = jnp.ones((N,), dtype=jnp.float32)
    beta = jnp.ones((N,), dtype=jnp.float32)

    out = jax.block_until_ready(adaptive_tanh(x, alpha, beta))
    ref = alpha.reshape(-1, 1) * jnp.tanh(beta.reshape(-1, 1) * x)
    assert out.shape == x.shape and out.dtype == x.dtype
    assert jnp.allclose(out, ref, atol=1e-6, rtol=1e-6)

    # 2) Non-trivial params, unaligned dims, ragged edge tiles (M=200 -> two
    #    lane tiles, the last one masked), default tile sizes.
    B2, N2, M2 = 2, 20, 200
    kx, ka, kb = jax.random.split(k2, 3)
    x2 = jax.random.normal(kx, (B2, N2, M2), dtype=jnp.float32)
    alpha2 = jax.random.normal(ka, (N2,), dtype=jnp.float32)
    beta2 = jax.random.normal(kb, (N2,), dtype=jnp.float32)
    out2 = jax.block_until_ready(adaptive_tanh(x2, alpha2, beta2))
    ref2 = alpha2.reshape(-1, 1) * jnp.tanh(beta2.reshape(-1, 1) * x2)
    assert out2.shape == x2.shape
    assert jnp.allclose(out2, ref2, atol=1e-5, rtol=1e-5)

    # 3) Same shapes with small tiles to exercise a multi-step grid and the
    #    row-stable parameter index map; also a bf16 input (f32 math inside).
    out3 = jax.block_until_ready(adaptive_tanh(x2, alpha2, beta2, tn=8, tm=128))
    assert jnp.allclose(out3, ref2, atol=1e-5, rtol=1e-5)

    xb = x2.astype(jnp.bfloat16)
    outb = jax.block_until_ready(adaptive_tanh(xb, alpha2, beta2))
    refb = (alpha2.reshape(-1, 1) * jnp.tanh(beta2.reshape(-1, 1)
                                             * xb.astype(jnp.float32)))
    assert outb.dtype == jnp.bfloat16
    assert jnp.allclose(outb.astype(jnp.float32), refb, atol=2e-2, rtol=2e-2)

    print("KERNEL_OK")
</pallas_src>

<mosaic_0001>
module attributes {stable_mosaic.version = 11 : i64} {
  func.func @_adaptive_tanh_kernel(%arg0: i32, %arg1: i32, %arg2: memref<8x1xf32, #tpu.memory_space<vmem>>, %arg3: memref<8x1xf32, #tpu.memory_space<vmem>>, %arg4: memref<8x16xf32, #tpu.memory_space<vmem>>, %arg5: memref<8x16xf32, #tpu.memory_space<vmem>>) attributes {dimension_semantics = [#tpu.dimension_semantics<parallel>, #tpu.dimension_semantics<parallel>], iteration_bounds = array<i64: 1, 1>, scalar_prefetch = 0 : i64, scratch_operands = 0 : i64, tpu.core_type = #tpu.core_type<tc>, window_params = [{transform_indices = @transform_0, window_bounds = array<i64: 8, 1>}, {transform_indices = @transform_1, window_bounds = array<i64: 8, 1>}, {transform_indices = @transform_2, window_bounds = array<i64: 8, 16>}, {transform_indices = @transform_3, window_bounds = array<i64: 8, 16>}]} {
    %c0 = arith.constant 0 : index
    %c0_0 = arith.constant 0 : index
    %0 = vector.load %arg4[%c0, %c0_0] : memref<8x16xf32, #tpu.memory_space<vmem>>, vector<8x16xf32>
    %c0_1 = arith.constant 0 : index
    %c0_2 = arith.constant 0 : index
    %1 = vector.load %arg2[%c0_1, %c0_2] : memref<8x1xf32, #tpu.memory_space<vmem>>, vector<8x1xf32>
    %c0_3 = arith.constant 0 : index
    %c0_4 = arith.constant 0 : index
    %2 = vector.load %arg3[%c0_3, %c0_4] : memref<8x1xf32, #tpu.memory_space<vmem>>, vector<8x1xf32>
    %3 = vector.broadcast %2 : vector<8x1xf32> to vector<8x16xf32>
    %4 = arith.mulf %3, %0 : vector<8x16xf32>
    %5 = math.tanh %4 : vector<8x16xf32>
    %6 = vector.broadcast %1 : vector<8x1xf32> to vector<8x16xf32>
    %7 = arith.mulf %6, %5 : vector<8x16xf32>
    %c0_5 = arith.constant 0 : index
    %c0_6 = arith.constant 0 : index
    %8 = vector.load %arg5[%c0_5, %c0_6] : memref<8x16xf32, #tpu.memory_space<vmem>>, vector<8x16xf32>
    tpu.vector_store %arg5[%c0_5, %c0_6], %7 {strides = array<i32>} : memref<8x16xf32, #tpu.memory_space<vmem>>, vector<8x16xf32>,
    return
  }
  func.func @transform_0(%arg0: i32, %arg1: i32) -> (i32, i32) {
    %c0_i32 = arith.constant 0 : i32
    %c0_i32_0 = arith.constant 0 : i32
    return %arg0, %c0_i32 : i32, i32
  }
  func.func @transform_1(%arg0: i32, %arg1: i32) -> (i32, i32) {
    %c0_i32 = arith.constant 0 : i32
    %c0_i32_0 = arith.constant 0 : i32
    return %arg0, %c0_i32 : i32, i32
  }
  func.func @transform_2(%arg0: i32, %arg1: i32) -> (i32, i32) {
    %c0_i32 = arith.constant 0 : i32
    return %arg0, %arg1 : i32, i32
  }
  func.func @transform_3(%arg0: i32, %arg1: i32) -> (i32, i32) {
    %c0_i32 = arith.constant 0 : i32
    return %arg0, %arg1 : i32, i32
  }
}

</mosaic_0001>

<bundles_post_ra>
// kernel: tpu_custom_call.1
= control target key start
LH: loop header
LB: loop body
LE: loop exit
PB: predicated region body
PF: predicated region fallthrough
CT: control target
= control target key end

     0   :  { %s119_s0 = inlined_call_operand.vmem [shape: f32[8,1], index: 0, kind: input, shape index: {}]   ;;  %s120_s1 = inlined_call_operand.vmem [shape: f32[8,1], index: 1, kind: input, shape index: {}]   ;;  %s121_s2 = inlined_call_operand.vmem [shape: f32[8,16], index: 2, kind: input, shape index: {}]   ;;  %s122_s3 = inlined_call_operand.hbm [shape: f32[8,16], index: 3, kind: output, shape index: {}]  }
   0x1   :  { %v17_v0 = vld [vmem:[%s120_s1] sm:$0xff] }
   0x2   :  { %8 = vsyncpa [#allocation3], 0  ;;  %v76_v1 = vmov 0   ;;  %v16_v2 = vld [vmem:[%s119_s0] sm:$0xff]  ;;  %s77_s18 = smov [#allocation2]   ;;  %vm31_vm0 = vcmask 130048  }
   0x3   :  { %49 = vset.pattern.permute.xlu0 %v76_v1  ;;  %v15_v3 = vld [vmem:[%s121_s2] sm:$0xff]  ;;  %s39_s19 = sshll.u32 %s77_s18, 4  ;;  %s40_s19 = int_to_ptr.vmem [resolvable:$true] %s39_s19 }
   0x4   :  { %20 = vperm.xlu0 %49, %v17_v0   ;;  %s52_s1 = scalar_lea.vmem %s40_s19, 128  ;;  %p57_p1 = scmp.lt.s32.totalorder %s40_s19, %s40_s19 }
   0x5   :  { %p53_p0 = scmp.ne.s32.totalorder %s40_s19, %s52_s1  ;;  %p58_p2 = scmp.lt.s32.totalorder %s52_s1, %s52_s1 }
   0x7   :  { %p59_p3 = por %p58_p2, %p57_p1 }
   0x8   :  { %27 = vperm.xlu0 %49, %v16_v2  }
   0x9   :  { %p60_p4 = pnand %p59_p3, %p53_p0 }
  0x83   :  { %v21_v4 = vpop.permute.xlu0 %20 }
  0x84   :  { %v23_v5 = vmul.f32 %v21_v4, %v15_v3 }
  0x86   :  { %50 = vtanh.f32 %v23_v5 }
  0x87   :  { %v28_v7 = vpop.permute.xlu0 %27 }
  0x90   :  { %v51_v6 = vpop.eup %50 }
  0x91   :  { %v30_v8 = vmul.f32 %v51_v6, %v28_v7 }
  0x93   :  { %32 = vst.msk [vmem:[#allocation2] sm:$0xff] %vm31_vm0, %v30_v8 }
  0x94   :  { %63 = shalt.err (!%p60_p4)
}
  0x95   :  { %s64_s20 = scalar_lea.hbm %s122_s3, 128 }
  0x96   :  { %p65_p5 = scmp.ne.s32.totalorder %s122_s3, %s64_s20  ;;  %p68_p6 = scmp.lt.u32.totalorder %s64_s20, %s122_s3 }
  0x98   :  { %p70_p7 = pnand %p68_p6, %p65_p5 }
  0x9a   :  { %73 = shalt.err (!%p70_p7)
}
  0x9b   :  { %42 = dma.vmem_to_hbm [thread:$0]  %s40_s19, 128, %s122_s3, [#allocation3]  }
  0x9c   :  { %74 = dma.done.wait [#allocation3], 128  }
  0x9d   :  { %75 = vsyncadd [#allocation3], 4294967168 }
  0x9e   :  { %46 = vsyncpa [#allocation3], 1 }

</bundles_post_ra>
